<compile_context>
chip_gen: v6e
topology: v6e:2x2x1
jax: 0.10.0
libtpu: 0.0.40
codegen_flags: <defaults>
</compile_context>

<pallas_src>
import numpy as np

import jax
import jax.numpy as jnp
from jax.experimental import pallas as pl
from jax.experimental.pallas import tpu as pltpu

# ---------------- model hyper-parameters (small, synthetic) -----------------
CATEGORICAL_FIELD_DIMS = [10, 20, 30]        # 3 categorical fields
NUMERICAL_NUM = 4
EMBED_DIM = 8
BOTTOM_MLP_DIMS = (32, 16)                   # expert / task_exclusive MLP
TOWER_MLP_DIMS = (16, 8)                     # tower MLP (+ final Linear(...,1))
TASK_NUM = 2
EXPERT_NUM = 3
BATCH = 8

NUM_FIELDS = len(CATEGORICAL_FIELD_DIMS)
EMBED_OUT_DIM = (NUM_FIELDS + 1) * EMBED_DIM      # 32
D1, D2 = BOTTOM_MLP_DIMS                          # 32, 16
T1, T2 = TOWER_MLP_DIMS                           # 16, 8

# --------- fused-layout derived constants ------------------------------------
CAT_DIM = NUM_FIELDS * EMBED_DIM                  # 24 (flattened categorical emb)
IN_DIM = CAT_DIM + NUMERICAL_NUM                  # 28 (numerical Linear folded in)
GATE_REAL = TASK_NUM * EXPERT_NUM                 # 6  gate logits
GATE_W = 8                                        # gate lanes (padded to 8)
N1 = GATE_W + (EXPERT_NUM + TASK_NUM) * D1        # 168 fused layer-1 columns
H2 = (EXPERT_NUM + TASK_NUM) * D2                 # 80  fused layer-2 width
SHARED_W = EXPERT_NUM * D2                        # 48  shared expert features
GW = TASK_NUM * EXPERT_NUM * D2                   # 96  gate-expanded width
TW = TASK_NUM * T1                                # 32  fused tower-1 width
T2W = TASK_NUM * T2                               # 16  fused tower-2 width
BIAS_W = 256                                      # lane-dense packed bias rows
NUM_BIAS_ROWS = 5
MXU_DT = jnp.bfloat16                             # MXU operand dtype (f32 accum)


# ------------------------------ Pallas kernel -------------------------------
def tfi_nts_kernel(cat_ref,   # (BT, CAT_DIM)        bf16 categorical embeddings
                   num_ref,   # (BT, NUMERICAL_NUM)  bf16 raw numerical features
                   w1_ref,    # (IN_DIM, N1)         bf16 fused layer 1 (+ gates)
                   w2_ref,    # (N1, H2)             bf16 block-diag layer 2
                   gm_ref,    # (2*GATE_W+H2, GW)    bf16 [E1; D; R] gate constants
                   tg_ref,    # (GW+H2, TW)          bf16 alpha-folded tower-1
                   wt_ref,    # (TW+T2W, T2W)        bf16 [tower-2; tower-3(pad)]
                   b_ref,     # (5, BIAS_W)          f32 packed biases
                   o_ref):    # (BT, TASK_NUM)       f32 sigmoid outputs
    f32 = jnp.float32

    # ---- fused layer 1: experts + task_exclusive + gate logits; the
    #      numerical Linear is folded host-side; two dots replace any concat.
    pre = (jnp.dot(cat_ref[...], w1_ref[0:CAT_DIM, :], preferred_element_type=f32)
           + jnp.dot(num_ref[...], w1_ref[CAT_DIM:IN_DIM, :],
                     preferred_element_type=f32)
           + b_ref[0:1, :N1])                                  # (BT, 168) f32
    h1 = jnp.maximum(pre, 0.0).astype(MXU_DT)                  # relu'd gate cols hit zero W2 rows

    # ---- fused layer 2: block-diagonal across 3 experts + 2 task_exclusive MLPs
    h2 = jnp.maximum(
        jnp.dot(h1, w2_ref[...], preferred_element_type=f32) + b_ref[1:2, :H2],
        0.0)                                                   # (BT, 80) f32
    h2b = h2.astype(MXU_DT)

    # ---- grouped gate softmax + expert mixing, matmul-only.
    #      Gate logits sit at lanes 0:8 of `pre` (offset-0 view); lanes 6:8 are
    #      padded with a -1e9 bias so exp() underflows to exactly 0.
    glog = pre[:, 0:GATE_W]
    m = jnp.max(glog, axis=-1, keepdims=True)      # per-row constant -> softmax-invariant
    e = jnp.exp(glog - m).astype(MXU_DT)
    num_exp = jnp.dot(e, gm_ref[0:GATE_W, :], preferred_element_type=f32)          # (BT, 96)
    den_exp = jnp.dot(e, gm_ref[GATE_W:2 * GATE_W, :], preferred_element_type=f32)  # (BT, 96)
    h2_rep = jnp.dot(h2b, gm_ref[2 * GATE_W:, :], preferred_element_type=f32)       # (BT, 96)
    weighted = (num_exp * h2_rep) / jnp.maximum(den_exp, 1e-30)  # gate-mixed expert features

    # ---- towers: alpha-blend + tower layer 1 pre-composed into TG; layers 2/3
    #      block-diagonal across tasks; final logits land at lanes 0:TASK_NUM.
    t1 = jnp.maximum(
        jnp.dot(weighted.astype(MXU_DT), tg_ref[0:GW, :], preferred_element_type=f32)
        + jnp.dot(h2b, tg_ref[GW:, :], preferred_element_type=f32)
        + b_ref[2:3, :TW], 0.0)                                # (BT, 32)
    t2 = jnp.maximum(
        jnp.dot(t1.astype(MXU_DT), wt_ref[0:TW, :], preferred_element_type=f32)
        + b_ref[3:4, :T2W], 0.0)                               # (BT, 16)
    logits = (jnp.dot(t2.astype(MXU_DT), wt_ref[TW:, :], preferred_element_type=f32)
              + b_ref[4:5, :T2W])                              # (BT, 16); real logits at 0:2
    o_ref[...] = jax.nn.sigmoid(logits[:, :TASK_NUM])


# ------------------------- host-side weight fusion --------------------------
def build_fused_params(params):
    (num_w, num_b, gate_w, gate_b, ew1, eb1, ew2, eb2,
     sw1, sb1, sw2, sb2, tw1, tb1, tw2, tb2, tw3, tb3) = params

    # fused first layer: columns = [gate0|gate1|pad(2)|exp0|exp1|exp2|task0|task1]
    gate_cols = jnp.concatenate([gate_w[t] for t in range(TASK_NUM)], axis=-1)   # (32, 6)
    gate_bias = jnp.concatenate([gate_b[t] for t in range(TASK_NUM)], axis=-1)   # (1, 6)
    main_cols = jnp.concatenate([ew1[e] for e in range(EXPERT_NUM)]
                                + [sw1[t] for t in range(TASK_NUM)], axis=-1)    # (32, 160)
    main_bias = jnp.concatenate([eb1[e] for e in range(EXPERT_NUM)]
                                + [sb1[t] for t in range(TASK_NUM)], axis=-1)    # (1, 160)
    pad_w = jnp.zeros((EMBED_OUT_DIM, GATE_W - GATE_REAL), jnp.float32)
    pad_b = jnp.full((1, GATE_W - GATE_REAL), -1e9, jnp.float32)   # exp() -> 0
    W1_full = jnp.concatenate([gate_cols, pad_w, main_cols], axis=-1)            # (32, 168)
    b1_full = jnp.concatenate([gate_bias, pad_b, main_bias], axis=-1)            # (1, 168)

    # fold numerical Linear:  emb @ V == cat @ V[:24] + (num@num_w + num_b) @ V[24:]
    W1 = jnp.concatenate([W1_full[:CAT_DIM], num_w @ W1_full[CAT_DIM:]], axis=0)  # (28, 168)
    b1 = b1_full + num_b @ W1_full[CAT_DIM:]                                      # (1, 168)

    # fused second layer: 8 zero rows (gate lanes) + block-diag bottom MLPs
    W2 = jnp.concatenate(
        [jnp.zeros((GATE_W, H2), jnp.float32),
         jax.scipy.linalg.block_diag(*([ew2[e] for e in range(EXPERT_NUM)]
                                       + [sw2[t] for t in range(TASK_NUM)]))],
        axis=0)                                                                   # (168, 80)
    b2 = jnp.concatenate([eb2[e] for e in range(EXPERT_NUM)]
                         + [sb2[t] for t in range(TASK_NUM)], axis=-1)            # (1, 80)

    # constant 0/1 matrices for the all-matmul gate softmax / expert mix
    E1 = np.zeros((GATE_W, GW), np.float32)    # expand exp(gate logits) to 96 lanes
    Dm = np.zeros((GATE_W, GW), np.float32)    # expand per-task softmax denominators
    R = np.zeros((H2, GW), np.float32)         # replicate shared expert features per task
    S01 = np.zeros((GW, TW), np.float32)       # sum experts -> per-task mixed features
    P01 = np.zeros((H2, TW), np.float32)       # select task_exclusive features
    for t in range(TASK_NUM):
        for e in range(EXPERT_NUM):
            k = t * EXPERT_NUM + e
            base = t * SHARED_W + e * D2
            E1[k, base:base + D2] = 1.0
            Dm[k, t * SHARED_W:(t + 1) * SHARED_W] = 1.0
            for j in range(D2):
                R[e * D2 + j, base + j] = 1.0
                S01[base + j, t * D2 + j] = 1.0
        for j in range(D2):
            P01[SHARED_W + t * D2 + j, t * D2 + j] = 1.0
    GM = jnp.asarray(np.concatenate([E1, Dm, R], axis=0))                         # (96, 96)

    # towers: layer 1 pre-composed with the selection matrices (alpha folded per call)
    WT1 = jax.scipy.linalg.block_diag(*[tw1[t] for t in range(TASK_NUM)])         # (32, 32)
    SW = jnp.asarray(S01) @ WT1                                                   # (96, 32)
    PW = jnp.asarray(P01) @ WT1                                                   # (80, 32)
    WT2 = jax.scipy.linalg.block_diag(*[tw2[t] for t in range(TASK_NUM)])         # (32, 16)
    WT3 = jax.scipy.linalg.block_diag(*[tw3[t] for t in range(TASK_NUM)])         # (16, 2)
    WT3p = jnp.pad(WT3, ((0, 0), (0, T2W - TASK_NUM)))                            # (16, 16)
    WT23 = jnp.concatenate([WT2, WT3p], axis=0)                                   # (48, 16)

    bt1 = jnp.concatenate([tb1[t] for t in range(TASK_NUM)], axis=-1)             # (1, 32)
    bt2 = jnp.concatenate([tb2[t] for t in range(TASK_NUM)], axis=-1)             # (1, 16)
    bt3 = jnp.pad(jnp.concatenate([tb3[t] for t in range(TASK_NUM)], axis=-1),
                  ((0, 0), (0, T2W - TASK_NUM)))                                  # (1, 16)

    def padrow(v):
        return jnp.pad(v, ((0, 0), (0, BIAS_W - v.shape[1])))

    Bpack = jnp.concatenate([padrow(b1), padrow(b2), padrow(bt1),
                             padrow(bt2), padrow(bt3)], axis=0).astype(jnp.float32)  # (5, 256)

    return dict(W1=W1.astype(MXU_DT), W2=W2.astype(MXU_DT), GM=GM.astype(MXU_DT),
                WT23=WT23.astype(MXU_DT), Bpack=Bpack,
                SW=SW.astype(jnp.float32), PW=PW.astype(jnp.float32))


# ------------------------------ kernel wrapper -------------------------------
def _round_up(x, m):
    return ((x + m - 1) // m) * m


def _batch_tiling(batch):
    """Pick batch tile + step count: large tiles (cap 512) to amortize per-step
    overhead; keep an even number of steps at large batch so the parallel grid
    axis can shard across v7x's two TensorCores."""
    tile_cap = 512
    if batch <= tile_cap:
        return _round_up(max(batch, 8), 8), 1
    steps = -(-batch // tile_cap)
    if steps % 2:
        steps += 1
    return _round_up(-(-batch // steps), 8), steps


def tfi_nts_forward(alpha, cat_flat, num_x, fused):
    """alpha: (TASK_NUM,) f32; cat_flat: (B, CAT_DIM); num_x: (B, NUMERICAL_NUM)."""
    B = cat_flat.shape[0]
    BT, steps = _batch_tiling(B)
    Bp = BT * steps

    cat = cat_flat.astype(MXU_DT)
    num = num_x.astype(MXU_DT)
    if Bp != B:
        cat = jnp.pad(cat, ((0, Bp - B), (0, 0)))
        num = jnp.pad(num, ((0, Bp - B), (0, 0)))

    # fold alpha / (1-alpha) into the pre-composed tower-1 weights (no alpha
    # input, no in-kernel blend, no task_exclusive lane slice)
    a_out = jnp.repeat(alpha.astype(jnp.float32), T1)                       # (32,)
    TG = jnp.concatenate([fused["SW"] * (1.0 - a_out)[None, :],
                          fused["PW"] * a_out[None, :]], axis=0).astype(MXU_DT)  # (176, 32)

    out = pl.pallas_call(
        tfi_nts_kernel,
        out_shape=jax.ShapeDtypeStruct((Bp, TASK_NUM), jnp.float32),
        grid=(steps,),
        in_specs=[
            pl.BlockSpec((BT, CAT_DIM), lambda i: (i, 0)),                  # categorical emb
            pl.BlockSpec((BT, NUMERICAL_NUM), lambda i: (i, 0)),            # numerical feats
            pl.BlockSpec((IN_DIM, N1), lambda i: (0, 0)),                   # fused W1
            pl.BlockSpec((N1, H2), lambda i: (0, 0)),                       # block-diag W2
            pl.BlockSpec((2 * GATE_W + H2, GW), lambda i: (0, 0)),          # gate constants
            pl.BlockSpec((GW + H2, TW), lambda i: (0, 0)),                  # alpha-folded tower-1
            pl.BlockSpec((TW + T2W, T2W), lambda i: (0, 0)),                # tower-2/3 pack
            pl.BlockSpec((NUM_BIAS_ROWS, BIAS_W), lambda i: (0, 0)),        # packed biases
        ],
        out_specs=pl.BlockSpec((BT, TASK_NUM), lambda i: (i, 0)),
        compiler_params=pltpu.CompilerParams(
            dimension_semantics=("parallel",)),
    )(cat, num, fused["W1"], fused["W2"], fused["GM"], TG, fused["WT23"],
      fused["Bpack"])

    # list of per-task (B,) sigmoid outputs, matching the PyTorch return value
    return [out[:B, t] for t in range(TASK_NUM)]


# ------------------------------- parameters ---------------------------------
def init_params(key):
    def nrm(k, shape, scale=0.1):
        return (scale * jax.random.normal(k, shape)).astype(jnp.float32)

    ks = iter(jax.random.split(key, 64))
    emb_table = nrm(next(ks), (sum(CATEGORICAL_FIELD_DIMS), EMBED_DIM))

    num_w = nrm(next(ks), (NUMERICAL_NUM, EMBED_DIM))
    num_b = nrm(next(ks), (1, EMBED_DIM), 0.01)

    gate_w = nrm(next(ks), (TASK_NUM, EMBED_OUT_DIM, EXPERT_NUM))
    gate_b = nrm(next(ks), (TASK_NUM, 1, EXPERT_NUM), 0.01)

    ew1 = nrm(next(ks), (EXPERT_NUM, EMBED_OUT_DIM, D1))
    eb1 = nrm(next(ks), (EXPERT_NUM, 1, D1), 0.01)
    ew2 = nrm(next(ks), (EXPERT_NUM, D1, D2))
    eb2 = nrm(next(ks), (EXPERT_NUM, 1, D2), 0.01)

    sw1 = nrm(next(ks), (TASK_NUM, EMBED_OUT_DIM, D1))
    sb1 = nrm(next(ks), (TASK_NUM, 1, D1), 0.01)
    sw2 = nrm(next(ks), (TASK_NUM, D1, D2))
    sb2 = nrm(next(ks), (TASK_NUM, 1, D2), 0.01)

    tw1 = nrm(next(ks), (TASK_NUM, D2, T1))
    tb1 = nrm(next(ks), (TASK_NUM, 1, T1), 0.01)
    tw2 = nrm(next(ks), (TASK_NUM, T1, T2))
    tb2 = nrm(next(ks), (TASK_NUM, 1, T2), 0.01)
    tw3 = nrm(next(ks), (TASK_NUM, T2, 1))
    tb3 = nrm(next(ks), (TASK_NUM, 1, 1), 0.01)

    params = (num_w, num_b, gate_w, gate_b, ew1, eb1, ew2, eb2,
              sw1, sb1, sw2, sb2, tw1, tb1, tw2, tb2, tw3, tb3)
    return emb_table, params


def embedding_lookup(emb_table, categorical_x):
    """EmbeddingLayer: shared table + per-field offsets (plain-JAX gather glue)."""
    offsets = jnp.asarray(
        [0] + list(jnp.cumsum(jnp.asarray(CATEGORICAL_FIELD_DIMS))[:-1]),
        dtype=jnp.int32)
    idx = categorical_x + offsets[None, :]           # (B, F)
    cat_emb = jnp.take(emb_table, idx, axis=0)       # (B, F, D)
    return cat_emb.reshape(categorical_x.shape[0], NUM_FIELDS * EMBED_DIM)


# -------------------------- pure-JAX reference ------------------------------
def reference_forward(alpha, cat_flat, num_x, params):
    (num_w, num_b, gate_w, gate_b, ew1, eb1, ew2, eb2,
     sw1, sb1, sw2, sb2, tw1, tb1, tw2, tb2, tw3, tb3) = params
    emb = jnp.concatenate([cat_flat, num_x @ num_w + num_b], axis=-1)
    share = []
    for e in range(EXPERT_NUM):
        h = jax.nn.relu(emb @ ew1[e] + eb1[e])
        share.append(jax.nn.relu(h @ ew2[e] + eb2[e]))
    share_fea = jnp.stack(share, axis=1)
    outs = []
    for t in range(TASK_NUM):
        gate = jax.nn.softmax(emb @ gate_w[t] + gate_b[t], axis=-1)
        task_share = jnp.einsum('be,bed->bd', gate, share_fea)
        h = jax.nn.relu(emb @ sw1[t] + sb1[t])
        spec = jax.nn.relu(h @ sw2[t] + sb2[t])
        fea = alpha[t] * spec + (1.0 - alpha[t]) * task_share
        h = jax.nn.relu(fea @ tw1[t] + tb1[t])
        h = jax.nn.relu(h @ tw2[t] + tb2[t])
        outs.append(jax.nn.sigmoid(h @ tw3[t] + tb3[t])[:, 0])
    return outs


# ---------------------------------- main -------------------------------------
if __name__ == "__main__":
    key = jax.random.PRNGKey(0)
    k_param, k_cat, k_num = jax.random.split(key, 3)

    emb_table, params = init_params(k_param)
    fused = build_fused_params(params)               # host-side weight packing

    field_dims = jnp.asarray(CATEGORICAL_FIELD_DIMS, dtype=jnp.int32)
    categorical_x = jax.random.randint(
        k_cat, (BATCH, NUM_FIELDS), 0, 10_000, dtype=jnp.int32) % field_dims[None, :]
    numerical_x = jax.random.normal(k_num, (BATCH, NUMERICAL_NUM), dtype=jnp.float32)
    alpha = jnp.asarray([0.7, 0.3], dtype=jnp.float32)

    cat_flat = embedding_lookup(emb_table, categorical_x)   # glue (gather)

    results = tfi_nts_forward(alpha, cat_flat, numerical_x, fused)
    results = [jax.block_until_ready(r) for r in results]

    ref = reference_forward(alpha, cat_flat, numerical_x, params)
    for r, rr in zip(results, ref):
        assert r.shape == (BATCH,)
        # tolerance covers bf16 MXU operands (f32 accumulation) plus f32
        # reassociation from the host-side weight fusion
        assert jnp.allclose(r, rr, atol=2e-2, rtol=2e-2), (r, rr)

    print("KERNEL_OK")
</pallas_src>

<mosaic_0001>
module attributes {stable_mosaic.version = 11 : i64} {
  func.func @tfi_nts_kernel(%arg0: i32, %arg1: memref<8x24xbf16, #tpu.memory_space<vmem>>, %arg2: memref<8x4xbf16, #tpu.memory_space<vmem>>, %arg3: memref<28x168xbf16, #tpu.memory_space<vmem>>, %arg4: memref<168x80xbf16, #tpu.memory_space<vmem>>, %arg5: memref<96x96xbf16, #tpu.memory_space<vmem>>, %arg6: memref<176x32xbf16, #tpu.memory_space<vmem>>, %arg7: memref<48x16xbf16, #tpu.memory_space<vmem>>, %arg8: memref<5x256xf32, #tpu.memory_space<vmem>>, %arg9: memref<8x2xf32, #tpu.memory_space<vmem>>) attributes {dimension_semantics = [#tpu.dimension_semantics<parallel>], iteration_bounds = array<i64: 1>, scalar_prefetch = 0 : i64, scratch_operands = 0 : i64, tpu.core_type = #tpu.core_type<tc>, window_params = [{transform_indices = @transform_0, window_bounds = array<i64: 8, 24>}, {transform_indices = @transform_1, window_bounds = array<i64: 8, 4>}, {pipeline_mode = #tpu.pipeline_mode<synchronous>, transform_indices = @transform_2, window_bounds = array<i64: 28, 168>}, {pipeline_mode = #tpu.pipeline_mode<synchronous>, transform_indices = @transform_3, window_bounds = array<i64: 168, 80>}, {pipeline_mode = #tpu.pipeline_mode<synchronous>, transform_indices = @transform_4, window_bounds = array<i64: 96, 96>}, {pipeline_mode = #tpu.pipeline_mode<synchronous>, transform_indices = @transform_5, window_bounds = array<i64: 176, 32>}, {pipeline_mode = #tpu.pipeline_mode<synchronous>, transform_indices = @transform_6, window_bounds = array<i64: 48, 16>}, {pipeline_mode = #tpu.pipeline_mode<synchronous>, transform_indices = @transform_7, window_bounds = array<i64: 5, 256>}, {transform_indices = @transform_8, window_bounds = array<i64: 8, 2>}]} {
    %c0 = arith.constant 0 : index
    %c0_0 = arith.constant 0 : index
    %0 = vector.load %arg1[%c0, %c0_0] : memref<8x24xbf16, #tpu.memory_space<vmem>>, vector<8x24xbf16>
    %c0_1 = arith.constant 0 : index
    %c0_2 = arith.constant 0 : index
    %1 = vector.load %arg3[%c0_1, %c0_2] : memref<28x168xbf16, #tpu.memory_space<vmem>>, vector<24x168xbf16>
    %cst = arith.constant dense<0.000000e+00> : vector<8x168xf32>
    %2 = tpu.matmul %0, %1, %cst {dimension_numbers = #tpu.dot_dimension_numbers<[1], [0], [0], [1], [0, 0, 1, 1], [], []>} : vector<8x24xbf16>, vector<24x168xbf16>, vector<8x168xf32> -> vector<8x168xf32>
    %c0_3 = arith.constant 0 : index
    %c0_4 = arith.constant 0 : index
    %3 = vector.load %arg2[%c0_3, %c0_4] : memref<8x4xbf16, #tpu.memory_space<vmem>>, vector<8x4xbf16>
    %c24 = arith.constant 24 : index
    %c0_5 = arith.constant 0 : index
    %4 = vector.load %arg3[%c24, %c0_5] : memref<28x168xbf16, #tpu.memory_space<vmem>>, vector<4x168xbf16>
    %cst_6 = arith.constant dense<0.000000e+00> : vector<8x168xf32>
    %5 = tpu.matmul %3, %4, %cst_6 {dimension_numbers = #tpu.dot_dimension_numbers<[1], [0], [0], [1], [0, 0, 1, 1], [], []>} : vector<8x4xbf16>, vector<4x168xbf16>, vector<8x168xf32> -> vector<8x168xf32>
    %6 = arith.addf %2, %5 : vector<8x168xf32>
    %c0_7 = arith.constant 0 : index
    %c0_8 = arith.constant 0 : index
    %7 = vector.load %arg8[%c0_7, %c0_8] : memref<5x256xf32, #tpu.memory_space<vmem>>, vector<1x168xf32>
    %8 = vector.broadcast %7 : vector<1x168xf32> to vector<8x168xf32>
    %9 = arith.addf %6, %8 : vector<8x168xf32>
    %cst_9 = arith.constant 0.000000e+00 : f32
    %10 = vector.broadcast %cst_9 : f32 to vector<8x168xf32>
    %11 = arith.maximumf %9, %10 : vector<8x168xf32>
    %12 = arith.truncf %11 : vector<8x168xf32> to vector<8x168xbf16>
    %c0_10 = arith.constant 0 : index
    %c0_11 = arith.constant 0 : index
    %13 = vector.load %arg4[%c0_10, %c0_11] : memref<168x80xbf16, #tpu.memory_space<vmem>>, vector<168x80xbf16>
    %cst_12 = arith.constant dense<0.000000e+00> : vector<8x80xf32>
    %14 = tpu.matmul %12, %13, %cst_12 {dimension_numbers = #tpu.dot_dimension_numbers<[1], [0], [0], [1], [0, 0, 1, 1], [], []>} : vector<8x168xbf16>, vector<168x80xbf16>, vector<8x80xf32> -> vector<8x80xf32>
    %c1 = arith.constant 1 : index
    %c0_13 = arith.constant 0 : index
    %15 = vector.load %arg8[%c1, %c0_13] : memref<5x256xf32, #tpu.memory_space<vmem>>, vector<1x80xf32>
    %16 = vector.broadcast %15 : vector<1x80xf32> to vector<8x80xf32>
    %17 = arith.addf %14, %16 : vector<8x80xf32>
    %cst_14 = arith.constant 0.000000e+00 : f32
    %18 = vector.broadcast %cst_14 : f32 to vector<8x80xf32>
    %19 = arith.maximumf %17, %18 : vector<8x80xf32>
    %20 = arith.truncf %19 : vector<8x80xf32> to vector<8x80xbf16>
    %21 = vector.extract_strided_slice %9 {offsets = [0, 0], sizes = [8, 8], strides = [1, 1]} : vector<8x168xf32> to vector<8x8xf32>
    %cst_15 = arith.constant dense<0xFF800000> : vector<8xf32>
    %22 = vector.multi_reduction <maximumf>, %21, %cst_15 [1] : vector<8x8xf32> to vector<8xf32>
    %23 = vector.shape_cast %22 : vector<8xf32> to vector<8x1xf32>
    %24 = vector.broadcast %23 : vector<8x1xf32> to vector<8x8xf32>
    %25 = arith.subf %21, %24 : vector<8x8xf32>
    %26 = math.exp %25 : vector<8x8xf32>
    %27 = arith.truncf %26 : vector<8x8xf32> to vector<8x8xbf16>
    %c0_16 = arith.constant 0 : index
    %c0_17 = arith.constant 0 : index
    %28 = vector.load %arg5[%c0_16, %c0_17] : memref<96x96xbf16, #tpu.memory_space<vmem>>, vector<8x96xbf16>
    %cst_18 = arith.constant dense<0.000000e+00> : vector<8x96xf32>
    %29 = tpu.matmul %27, %28, %cst_18 {dimension_numbers = #tpu.dot_dimension_numbers<[1], [0], [0], [1], [0, 0, 1, 1], [], []>} : vector<8x8xbf16>, vector<8x96xbf16>, vector<8x96xf32> -> vector<8x96xf32>
    %c8 = arith.constant 8 : index
    %c0_19 = arith.constant 0 : index
    %30 = vector.load %arg5[%c8, %c0_19] : memref<96x96xbf16, #tpu.memory_space<vmem>>, vector<8x96xbf16>
    %cst_20 = arith.constant dense<0.000000e+00> : vector<8x96xf32>
    %31 = tpu.matmul %27, %30, %cst_20 {dimension_numbers = #tpu.dot_dimension_numbers<[1], [0], [0], [1], [0, 0, 1, 1], [], []>} : vector<8x8xbf16>, vector<8x96xbf16>, vector<8x96xf32> -> vector<8x96xf32>
    %c16 = arith.constant 16 : index
    %c0_21 = arith.constant 0 : index
    %32 = vector.load %arg5[%c16, %c0_21] : memref<96x96xbf16, #tpu.memory_space<vmem>>, vector<80x96xbf16>
    %cst_22 = arith.constant dense<0.000000e+00> : vector<8x96xf32>
    %33 = tpu.matmul %20, %32, %cst_22 {dimension_numbers = #tpu.dot_dimension_numbers<[1], [0], [0], [1], [0, 0, 1, 1], [], []>} : vector<8x80xbf16>, vector<80x96xbf16>, vector<8x96xf32> -> vector<8x96xf32>
    %34 = arith.mulf %29, %33 : vector<8x96xf32>
    %cst_23 = arith.constant 1.000000e-30 : f32
    %35 = vector.broadcast %cst_23 : f32 to vector<8x96xf32>
    %36 = arith.maximumf %31, %35 : vector<8x96xf32>
    %37 = arith.divf %34, %36 : vector<8x96xf32>
    %38 = arith.truncf %37 : vector<8x96xf32> to vector<8x96xbf16>
    %c0_24 = arith.constant 0 : index
    %c0_25 = arith.constant 0 : index
    %39 = vector.load %arg6[%c0_24, %c0_25] : memref<176x32xbf16, #tpu.memory_space<vmem>>, vector<96x32xbf16>
    %cst_26 = arith.constant dense<0.000000e+00> : vector<8x32xf32>
    %40 = tpu.matmul %38, %39, %cst_26 {dimension_numbers = #tpu.dot_dimension_numbers<[1], [0], [0], [1], [0, 0, 1, 1], [], []>} : vector<8x96xbf16>, vector<96x32xbf16>, vector<8x32xf32> -> vector<8x32xf32>
    %c96 = arith.constant 96 : index
    %c0_27 = arith.constant 0 : index
    %41 = vector.load %arg6[%c96, %c0_27] : memref<176x32xbf16, #tpu.memory_space<vmem>>, vector<80x32xbf16>
    %cst_28 = arith.constant dense<0.000000e+00> : vector<8x32xf32>
    %42 = tpu.matmul %20, %41, %cst_28 {dimension_numbers = #tpu.dot_dimension_numbers<[1], [0], [0], [1], [0, 0, 1, 1], [], []>} : vector<8x80xbf16>, vector<80x32xbf16>, vector<8x32xf32> -> vector<8x32xf32>
    %43 = arith.addf %40, %42 : vector<8x32xf32>
    %c2 = arith.constant 2 : index
    %c0_29 = arith.constant 0 : index
    %44 = vector.load %arg8[%c2, %c0_29] : memref<5x256xf32, #tpu.memory_space<vmem>>, vector<1x32xf32>
    %45 = vector.broadcast %44 : vector<1x32xf32> to vector<8x32xf32>
    %46 = arith.addf %43, %45 : vector<8x32xf32>
    %cst_30 = arith.constant 0.000000e+00 : f32
    %47 = vector.broadcast %cst_30 : f32 to vector<8x32xf32>
    %48 = arith.maximumf %46, %47 : vector<8x32xf32>
    %49 = arith.truncf %48 : vector<8x32xf32> to vector<8x32xbf16>
    %c0_31 = arith.constant 0 : index
    %c0_32 = arith.constant 0 : index
    %50 = vector.load %arg7[%c0_31, %c0_32] : memref<48x16xbf16, #tpu.memory_space<vmem>>, vector<32x16xbf16>
    %cst_33 = arith.constant dense<0.000000e+00> : vector<8x16xf32>
    %51 = tpu.matmul %49, %50, %cst_33 {dimension_numbers = #tpu.dot_dimension_numbers<[1], [0], [0], [1], [0, 0, 1, 1], [], []>} : vector<8x32xbf16>, vector<32x16xbf16>, vector<8x16xf32> -> vector<8x16xf32>
    %c3 = arith.constant 3 : index
    %c0_34 = arith.constant 0 : index
    %52 = vector.load %arg8[%c3, %c0_34] : memref<5x256xf32, #tpu.memory_space<vmem>>, vector<1x16xf32>
    %53 = vector.broadcast %52 : vector<1x16xf32> to vector<8x16xf32>
    %54 = arith.addf %51, %53 : vector<8x16xf32>
    %cst_35 = arith.constant 0.000000e+00 : f32
    %55 = vector.broadcast %cst_35 : f32 to vector<8x16xf32>
    %56 = arith.maximumf %54, %55 : vector<8x16xf32>
    %57 = arith.truncf %56 : vector<8x16xf32> to vector<8x16xbf16>
    %c32 = arith.constant 32 : index
    %c0_36 = arith.constant 0 : index
    %58 = vector.load %arg7[%c32, %c0_36] : memref<48x16xbf16, #tpu.memory_space<vmem>>, vector<16x16xbf16>
    %cst_37 = arith.constant dense<0.000000e+00> : vector<8x16xf32>
    %59 = tpu.matmul %57, %58, %cst_37 {dimension_numbers = #tpu.dot_dimension_numbers<[1], [0], [0], [1], [0, 0, 1, 1], [], []>} : vector<8x16xbf16>, vector<16x16xbf16>, vector<8x16xf32> -> vector<8x16xf32>
    %c4 = arith.constant 4 : index
    %c0_38 = arith.constant 0 : index
    %60 = vector.load %arg8[%c4, %c0_38] : memref<5x256xf32, #tpu.memory_space<vmem>>, vector<1x16xf32>
    %61 = vector.broadcast %60 : vector<1x16xf32> to vector<8x16xf32>
    %62 = arith.addf %59, %61 : vector<8x16xf32>
    %63 = vector.extract_strided_slice %62 {offsets = [0, 0], sizes = [8, 2], strides = [1, 1]} : vector<8x16xf32> to vector<8x2xf32>
    %64 = arith.negf %63 : vector<8x2xf32>
    %65 = math.exp %64 : vector<8x2xf32>
    %cst_39 = arith.constant 1.000000e+00 : f32
    %66 = vector.broadcast %cst_39 : f32 to vector<8x2xf32>
    %67 = arith.addf %66, %65 : vector<8x2xf32>
    %68 = arith.divf %66, %67 : vector<8x2xf32>
    %c0_40 = arith.constant 0 : index
    %c0_41 = arith.constant 0 : index
    %69 = vector.load %arg9[%c0_40, %c0_41] : memref<8x2xf32, #tpu.memory_space<vmem>>, vector<8x2xf32>
    tpu.vector_store %arg9[%c0_40, %c0_41], %68 {strides = array<i32>} : memref<8x2xf32, #tpu.memory_space<vmem>>, vector<8x2xf32>,
    return
  }
  func.func @transform_0(%arg0: i32) -> (i32, i32) {
    %c0_i32 = arith.constant 0 : i32
    %c0_i32_0 = arith.constant 0 : i32
    return %arg0, %c0_i32 : i32, i32
  }
  func.func @transform_1(%arg0: i32) -> (i32, i32) {
    %c0_i32 = arith.constant 0 : i32
    %c0_i32_0 = arith.constant 0 : i32
    return %arg0, %c0_i32 : i32, i32
  }
  func.func @transform_2(%arg0: i32) -> (i32, i32) {
    %c0_i32 = arith.constant 0 : i32
    %c0_i32_0 = arith.constant 0 : i32
    %c0_i32_1 = arith.constant 0 : i32
    return %c0_i32, %c0_i32_0 : i32, i32
  }
  func.func @transform_3(%arg0: i32) -> (i32, i32) {
    %c0_i32 = arith.constant 0 : i32
    %c0_i32_0 = arith.constant 0 : i32
    %c0_i32_1 = arith.constant 0 : i32
    return %c0_i32, %c0_i32_0 : i32, i32
  }
  func.func @transform_4(%arg0: i32) -> (i32, i32) {
    %c0_i32 = arith.constant 0 : i32
    %c0_i32_0 = arith.constant 0 : i32
    %c0_i32_1 = arith.constant 0 : i32
    return %c0_i32, %c0_i32_0 : i32, i32
  }
  func.func @transform_5(%arg0: i32) -> (i32, i32) {
    %c0_i32 = arith.constant 0 : i32
    %c0_i32_0 = arith.constant 0 : i32
    %c0_i32_1 = arith.constant 0 : i32
    return %c0_i32, %c0_i32_0 : i32, i32
  }
  func.func @transform_6(%arg0: i32) -> (i32, i32) {
    %c0_i32 = arith.constant 0 : i32
    %c0_i32_0 = arith.constant 0 : i32
    %c0_i32_1 = arith.constant 0 : i32
    return %c0_i32, %c0_i32_0 : i32, i32
  }
  func.func @transform_7(%arg0: i32) -> (i32, i32) {
    %c0_i32 = arith.constant 0 : i32
    %c0_i32_0 = arith.constant 0 : i32
    %c0_i32_1 = arith.constant 0 : i32
    return %c0_i32, %c0_i32_0 : i32, i32
  }
  func.func @transform_8(%arg0: i32) -> (i32, i32) {
    %c0_i32 = arith.constant 0 : i32
    %c0_i32_0 = arith.constant 0 : i32
    return %arg0, %c0_i32 : i32, i32
  }
}

</mosaic_0001>

<bundles_post_ra>
// kernel: tpu_custom_call.1
= control target key start
LH: loop header
LB: loop body
LE: loop exit
PB: predicated region body
PF: predicated region fallthrough
CT: control target
= control target key end

     0   :  { %vm45_vm0 = vcmask 1041408   ;;  %v999_v1 = vmov 0   ;;  %vm41_vm1 = vcmask 31744   ;;  %vm112_vm2 = vcmask 1043456   ;;  %s1224_s2 = inlined_call_operand.vmem [shape: bf16[28,168], index: 2, kind: input, shape index: {}]   ;;  %s1225_s1 = inlined_call_operand.vmem [shape: bf16[8,4], index: 1, kind: input, shape index: {}]   ;;  %s1226_s3 = inlined_call_operand.vmem [shape: bf16[168,80], index: 3, kind: input, shape index: {}]   ;;  %s1227_s0 = inlined_call_operand.vmem [shape: bf16[8,24], index: 0, kind: input, shape index: {}]   ;;  %s1228_s7 = inlined_call_operand.vmem [shape: f32[5,256], index: 7, kind: input, shape index: {}]   ;;  %s1229_s4 = inlined_call_operand.vmem [shape: bf16[96,96], index: 4, kind: input, shape index: {}]   ;;  %s1230_s5 = inlined_call_operand.vmem [shape: bf16[176,32], index: 5, kind: input, shape index: {}]   ;;  %s1231_s6 = inlined_call_operand.vmem [shape: bf16[48,16], index: 6, kind: input, shape index: {}]   ;;  %s1232_s8 = inlined_call_operand.vmem [shape: f32[8,2], index: 8, kind: output, shape index: {}]  }
   0x1   :  { %v35_v0 = vld [vmem:[%s1224_s2 + $0x18] sm:$0x33]  ;;  %84 = vmatprep.mubr.bf16.mxu1 %v999_v1  ;;  %v33_v2 = vld [vmem:[%s1224_s2 + $0x10] sm:$0xff]  ;;  %270 = vmatprep.subr.bf16.mxu0 %v999_v1  ;;  %v34_v7 = vld [vmem:[%s1225_s1] sm:$0xf]  ;;  %vm108_vm3 = vcmask 195584   ;;  %v162_v25 = vlaneseq }
   0x2   :  { %v805_v3 = vcombine.high %v35_v0, %v35_v0  ;;  %v804_v4 = vcombine.low %v35_v0, %v35_v0  ;;  %v811_v5 = vcombine.high %v33_v2, %v33_v2  ;;  %v810_v6 = vcombine.low %v33_v2, %v33_v2  ;;  %v960_v9 = vld [vmem:[%s1224_s2 + $0x4] ss:$8 sps:$4 sm:$0xff]   ;;  %v961_v10 = vld [vmem:[%s1226_s3 + $0x38] sm:$0xff]   ;;  %v962_v12 = vld [vmem:[%s1226_s3 + $0x30] sm:$0xff]  }
   0x3   :  { %271 = vmatpush1.bf16.msra.mxu0 %v961_v10  ;;  %v958_v13 = vld [vmem:[%s1224_s2] ss:$8 sps:$4 sm:$0xff]   ;;  %v965_v17 = vld [vmem:[%s1226_s3 + $0x18] sm:$0xff]   ;;  %v966_v18 = vld [vmem:[%s1226_s3 + $0x10] sm:$0xff]   ;;  %v163_v26 = vshrl.u32 %v162_v25, 7  ;;  %vm312_vm4 = vcmask 64512  }
   0x4   :  { %806 = vmatprep.subr.msk.bf16.mxu1 %vm45_vm0, %v805_v3  ;;  %v47_v8 = vsel %vm45_vm0, %v804_v4, 0  ;;  %v114_v11 = vsel %vm112_vm2, %v810_v6, 0  ;;  %272 = vmatprep.subr.bf16.mxu0 %v999_v1  ;;  %v963_v14 = vld [vmem:[%s1226_s3 + $0x28] sm:$0xff]   ;;  %v30_v15 = vld [vmem:[%s1227_s0] sm:$0xf]  ;;  %vm263_vm5 = vcmask 326656  }
   0x5   :  { %67 = vmatpush1.bf16.msra.mxu1 %v47_v8  ;;  %v964_v16 = vld [vmem:[%s1226_s3 + $0x20] sm:$0xff]   ;;  %v967_v19 = vld [vmem:[%s1226_s3 + $0x8] sm:$0xff]   ;;  %v969_v21 = vld [vmem:[%s1226_s3 + $0x50] ss:$0 sps:$4 sm:$0xff]   ;;  %v164_v29 = vsub.s32 0, %v163_v26  ;;  %v168_v32 = vsub.s32 1, %v163_v26 }
   0x6   :  { %812 = vmatprep.subr.msk.bf16.mxu1 %vm112_vm2, %v811_v5  ;;  %v968_v20 = vld [vmem:[%s1226_s3] sm:$0xff]   ;;  %v268_v22 = vsel %vm112_vm2, %v969_v21, 0  ;;  %v970_v23 = vld [vmem:[%s1226_s3 + $0x48] sm:$0xff]   ;;  %v1000_v50 = vmov 0.0   ;;  %vm1001_vm6 = vmmov 0   ;;  %v974_v61 = vld [vmem:[%s1229_s4 + $0x18] sm:$0xff]  }
   0x7   :  { %273 = vmatpush1.bf16.msra.mxu0 %v962_v12  ;;  %v971_v24 = vld [vmem:[%s1226_s3 + $0x40] sm:$0xff]   ;;  %v972_v59 = vld [vmem:[%s1229_s4 + $0x28] sm:$0xff]   ;;  %v975_v62 = vld [vmem:[%s1229_s4 + $0x10] sm:$0xff]   ;;  %vm451_vm7 = vcmask 654336   ;;  %vm628_vm8 = vcmask 785408   ;;  %vm693_vm9 = vcmask 261120  }
   0x8   :  { %807 = vmatmul.mubr.msk.bf16.vlgmr.msra.gmra.mxu1 %vm41_vm1, %v34_v7  ;;  %274 = vmatprep.subr.bf16.mxu0 %v999_v1  ;;  %v160_v31 = vld [vmem:[%s1228_s7] ss:$8 sm:$0x3]  ;;  %v367_v55 = vld [vmem:[%s1229_s4 + $0x4] sm:$0xf]  ;;  %v977_v6 = vld [vmem:[%s1230_s5 + $0x50] sm:$0xff]  }
   0x9   :  { %132 = vmatpush1.bf16.msra.mxu1 %v114_v11  ;;  %151 = vmatprep.mubr.bf16.mxu1 %v999_v1  ;;  %v165_v34 = vrot.slane %v160_v31, %v164_v29  ;;  %v169_v37 = vrot.slane %v160_v31, %v168_v32  ;;  %v320_v49 = vld [vmem:[%s1229_s4] sm:$0xf]  ;;  %v369_v58 = vsel %vm112_vm2, %v367_v55, 0  ;;  %v976_v63 = vld [vmem:[%s1229_s4 + $0x8] sm:$0xff]   ;;  %v980_v11 = vld [vmem:[%s1230_s5 + $0x38] sm:$0xff]   ;;  %vm748_vm10 = vcmask 130048  }
   0xa   :  { %133 = vmatprep.subr.bf16.mxu1 %v960_v9  ;;  %v325_v51 = vsel %vm112_vm2, %v320_v49, 0  ;;  %v973_v60 = vld [vmem:[%s1229_s4 + $0x20] sm:$0xff]   ;;  %v978_v9 = vld [vmem:[%s1230_s5 + $0x48] sm:$0xff]   ;;  %v981_v12 = vld [vmem:[%s1230_s5 + $0x30] sm:$0xff]   ;;  %vm798_vm11 = vcmask 15360  }
   0xb   :  { %275 = vmatpush1.bf16.msra.mxu0 %v963_v14  ;;  %v199_v0 = vld [vmem:[%s1228_s7 + $0x1] ss:$0 sm:$0xff] }
   0xc   :  { %276 = vmatprep.subr.bf16.mxu0 %v999_v1  ;;  %v979_v10 = vld [vmem:[%s1230_s5 + $0x40] sm:$0xff]  }
   0xd   :  { %134 = vmatpush1.bf16.msra.mxu1 %v958_v13  ;;  %v982_v13 = vld [vmem:[%s1230_s5 + $0x28] sm:$0xff]   ;;  %v983_v14 = vld [vmem:[%s1230_s5 + $0x20] sm:$0xff]  }
   0xe   :  { %881 = vmatprep.subr.bf16.mxu1 %v1000_v50 }
   0xf   :  { %277 = vmatpush1.bf16.msra.mxu0 %v964_v16  ;;  %v985_v16 = vld [vmem:[%s1230_s5 + $0x10] sm:$0xff]  }
  0x10   :  { %813 = vmatmul.mubr.msk.bf16.vlgmr.msra.gmra.mxu1 %vm108_vm3, %v30_v15  ;;  %278 = vmatprep.subr.bf16.mxu0 %v999_v1  ;;  %v984_v15 = vld [vmem:[%s1230_s5 + $0x18] sm:$0xff]  }
  0x11   :  { %882 = vmatpush3.bf16.msra.mxu1 %v325_v51  ;;  %883 = vmatprep.mubr.msk.bf16.mxu1 %vm1001_vm6, %v1000_v50 }
  0x12   :  { %887 = vmatprep.subr.bf16.mxu1 %v1000_v50 }
  0x13   :  { %279 = vmatpush1.bf16.msra.mxu0 %v965_v17  ;;  %v986_v17 = vld [vmem:[%s1230_s5 + $0x8] sm:$0xff]  }
  0x14   :  { %280 = vmatprep.subr.bf16.mxu0 %v999_v1 }
  0x17   :  { %281 = vmatpush1.bf16.msra.mxu0 %v966_v18  ;;  %v987_v18 = vld [vmem:[%s1230_s5] sm:$0xff]  }
  0x18   :  { %282 = vmatprep.subr.bf16.mxu0 %v999_v1 }
  0x1b   :  { %283 = vmatpush1.bf16.msra.mxu0 %v967_v19 }
  0x1c   :  { %284 = vmatprep.subr.bf16.mxu0 %v999_v1 }
  0x1f   :  { %285 = vmatpush1.bf16.msra.mxu0 %v968_v20 }
  0x20   :  { %296 = vmatprep.subr.bf16.mxu0 %v999_v1 }
  0x23   :  { %297 = vmatpush2.bf16.msra.mxu0 %v268_v22 }
  0x24   :  { %298 = vmatprep.subr.bf16.mxu0 %v999_v1 }
  0x27   :  { %299 = vmatpush2.bf16.msra.mxu0 %v970_v23 }
  0x28   :  { %300 = vmatprep.subr.bf16.mxu0 %v999_v1 }
  0x2b   :  { %301 = vmatpush2.bf16.msra.mxu0 %v971_v24 }
  0x2c   :  { %921 = vmatprep.subr.bf16.mxu0 %v1000_v50 }
  0xc8   :  { %v86_v27 = vpop.f32.mrf.mxu1 }
  0xca   :  { %v88_v28 = vpop.f32.mrf.mxu1 }
  0xcc   :  { %v90_v30 = vpop.f32.mrf.mxu1 }
  0xce   :  { %v91_v33 = vpop.f32.mrf.mxu1 }
  0xd0   :  { %v153_v35 = vpop.f32.mrf.mxu1 }
  0xd1   :  { %v154_v36 = vadd.f32 %v153_v35, %v86_v27 }
  0xd2   :  { %v155_v38 = vpop.f32.mrf.mxu1 }
  0xd3   :  { %v172_v39 = vadd.f32 %v165_v34, %v154_v36  ;;  %v156_v40 = vadd.f32 %v155_v38, %v88_v28 }
  0xd4   :  { %v157_v41 = vpop.f32.mrf.mxu1 }
  0xd5   :  { %v313_v42 = vsel %vm312_vm4, %v172_v39, -inf  ;;  %v173_v43 = vadd.f32 %v169_v37, %v156_v40  ;;  %v174_v45 = vmax.f32 %v172_v39, 0.0  ;;  %v988_v40 = vld [vmem:[%s1231_s6 + $0x8] sm:$0xff]   ;;  %v989_v41 = vld [vmem:[%s1231_s6] sm:$0xff]  }
  0xd6   :  { %v158_v44 = vpop.f32.mrf.mxu1  ;;  %314 = vmax.xlane.f32.xlu0 %v313_v42 }
  0xd7   :  { %v175_v46 = vmax.f32 %v173_v43, 0.0  ;;  %v176_v48 = vpack.c.bf16 %v174_v45, %v174_v45  ;;  %v672_v43 = vld [vmem:[%s1228_s7 + $0x2] ss:$0 sm:$0xff] }
  0xd9   :  { %v177_v47 = vpack.c.bf16 %v175_v46, %v175_v46 }
  0xdb   :  { %825 = vmatprep.mubr.msk.bf16.mxu0 %vm263_vm5, %v177_v47 }
  0xdc   :  { %303 = vmatmul.mubr.bf16.vlgmr.msra.gmra.mxu0 %v176_v48 }
  0xdd   :  { %933 = vmatprep.mubr.msk.bf16.mxu0 %vm1001_vm6, %v1000_v50  ;;  %922 = vmatpush3.bf16.msra.mxu0 %v982_v13 }
  0xde   :  { %923 = vmatprep.subr.bf16.mxu0 %v1000_v50 }
  0xe1   :  { %924 = vmatpush3.bf16.msra.mxu0 %v983_v14 }
  0xe2   :  { %925 = vmatprep.subr.bf16.mxu0 %v1000_v50 }
  0xe5   :  { %926 = vmatpush3.bf16.msra.mxu0 %v984_v15 }
  0xe6   :  { %927 = vmatprep.subr.bf16.mxu0 %v1000_v50 }
  0xe9   :  { %928 = vmatpush3.bf16.msra.mxu0 %v985_v16 }
  0xea   :  { %929 = vmatprep.subr.bf16.mxu0 %v1000_v50 }
  0xed   :  { %930 = vmatpush3.bf16.msra.mxu0 %v986_v17 }
  0xee   :  { %931 = vmatprep.subr.bf16.mxu0 %v1000_v50 }
  0xf1   :  { %932 = vmatpush3.bf16.msra.mxu0 %v987_v18 }
  0xf2   :  { %945 = vmatprep.subr.bf16.mxu0 %v1000_v50 }
 0x15f   :  { %v315_v52 = vpop.xlane.xlu0 %314 }
 0x160   :  { %v316_v53 = vsub.f32 %v172_v39, %v315_v52  ;;  %v680_v52 = vld [vmem:[%s1228_s7 + $0x3] ss:$0 sm:$0xff] }
 0x162   :  { %v317_v54 = vmul.f32 1.442695, %v316_v53 }
 0x164   :  { %991 = vpow2.f32 %v317_v54 }
 0x171   :  { %v992_v56 = vpop.eup %991 }
 0x172   :  { %v319_v57 = vpack.c.bf16 %v992_v56, %v992_v56 }
 0x174   :  { %884 = vmatmul.mubr.msk.bf16.vlgmr.msra.gmra.mxu1 %vm312_vm4, %v319_v57 }
 0x175   :  { %888 = vmatpush3.bf16.msra.mxu1 %v369_v58  ;;  %889 = vmatprep.mubr.msk.bf16.mxu1 %vm1001_vm6, %v1000_v50 }
 0x176   :  { %893 = vmatprep.subr.bf16.mxu1 %v1000_v50 }
 0x17c   :  { %890 = vmatmul.mubr.msk.bf16.vlgmr.msra.gmra.mxu1 %vm312_vm4, %v319_v57 }
 0x17d   :  { %894 = vmatpush3.bf16.msra.mxu1 %v972_v59  ;;  %903 = vmatprep.mubr.msk.bf16.mxu1 %vm1001_vm6, %v1000_v50 }
 0x17e   :  { %895 = vmatprep.subr.bf16.mxu1 %v1000_v50 }
 0x181   :  { %896 = vmatpush3.bf16.msra.mxu1 %v973_v60  ;;  %v741_v60 = vld [vmem:[%s1228_s7 + $0x4] ss:$0 sm:$0xff] }
 0x182   :  { %897 = vmatprep.subr.bf16.mxu1 %v1000_v50 }
 0x185   :  { %898 = vmatpush3.bf16.msra.mxu1 %v974_v61 }
 0x186   :  { %899 = vmatprep.subr.bf16.mxu1 %v1000_v50 }
 0x189   :  { %900 = vmatpush3.bf16.msra.mxu1 %v975_v62 }
 0x18a   :  { %901 = vmatprep.subr.bf16.mxu1 %v1000_v50 }
 0x18d   :  { %902 = vmatpush3.bf16.msra.mxu1 %v976_v63 }
 0x18e   :  { %907 = vmatprep.subr.bf16.mxu1 %v1000_v50 }
 0x19c   :  { %v304_v1 = vpop.f32.mrf.mxu0 }
 0x19d   :  { %v305_v2 = vadd.f32 %v304_v1, %v199_v0 }
 0x19e   :  { %v306_v3 = vpop.f32.mrf.mxu0 }
 0x19f   :  { %v310_v4 = vmax.f32 %v305_v2, 0.0 }
 0x1a0   :  { %v307_v5 = vpop.f32.mrf.mxu0 }
 0x1a1   :  { %v311_v7 = vpack.c.bf16 %v310_v4, %v310_v4 }
 0x1a2   :  { %v308_v8 = vpop.f32.mrf.mxu0 }
 0x1a3   :  { %904 = vmatmul.mubr.msk.bf16.vlgmr.msra.gmra.mxu1 %vm451_vm7, %v311_v7 }
 0x1a4   :  { %908 = vmatpush3.bf16.msra.mxu1 %v977_v6  ;;  %917 = vmatprep.mubr.msk.bf16.mxu1 %vm1001_vm6, %v1000_v50 }
 0x1a5   :  { %909 = vmatprep.subr.bf16.mxu1 %v1000_v50 }
 0x1a8   :  { %910 = vmatpush3.bf16.msra.mxu1 %v978_v9 }
 0x1a9   :  { %911 = vmatprep.subr.bf16.mxu1 %v1000_v50 }
 0x1ac   :  { %912 = vmatpush3.bf16.msra.mxu1 %v979_v10 }
 0x1ad   :  { %913 = vmatprep.subr.bf16.mxu1 %v1000_v50 }
 0x1b0   :  { %914 = vmatpush3.bf16.msra.mxu1 %v980_v11 }
 0x1b1   :  { %915 = vmatprep.subr.bf16.mxu1 %v1000_v50 }
 0x1b4   :  { %916 = vmatpush3.bf16.msra.mxu1 %v981_v12 }
 0x1b5   :  { %937 = vmatprep.subr.bf16.mxu1 %v1000_v50 }
 0x1b7   :  { %918 = vmatmul.mubr.msk.bf16.vlgmr.msra.gmra.mxu1 %vm451_vm7, %v311_v7 }
 0x1b8   :  { %941 = vmatprep.mubr.msk.bf16.mxu1 %vm1001_vm6, %v1000_v50  ;;  %938 = vmatpush3.bf16.msra.mxu1 %v988_v40 }
 0x1b9   :  { %939 = vmatprep.subr.bf16.mxu1 %v1000_v50 }
 0x1bc   :  { %940 = vmatpush3.bf16.msra.mxu1 %v989_v41 }
 0x234   :  { %v361_v19 = vpop.f32.mrf.mxu1 }
 0x236   :  { %v885_v20 = vpop.f32.mrf.mxu1 }
 0x238   :  { %v364_v21 = vpop.f32.mrf.mxu1 }
 0x23a   :  { %v886_v22 = vpop.f32.mrf.mxu1 }
 0x23c   :  { %v405_v23 = vpop.f32.mrf.mxu1 }
 0x23d   :  { %v496_v27 = vmax.f32 %v405_v23, 1e-30 }
 0x23e   :  { %v891_v24 = vpop.f32.mrf.mxu1 }
 0x23f   :  { %993 = vrcp.f32 %v496_v27 }
 0x240   :  { %v408_v25 = vpop.f32.mrf.mxu1 }
 0x242   :  { %v892_v26 = vpop.f32.mrf.mxu1 }
 0x24c   :  { %v994_v30 = vpop.eup %993 }
 0x263   :  { %v489_v28 = vpop.f32.mrf.mxu1 }
 0x264   :  { %v495_v29 = vmul.f32 %v489_v28, %v361_v19 }
 0x265   :  { %v905_v31 = vpop.f32.mrf.mxu1 }
 0x266   :  { %v498_v32 = vmul.f32 %v994_v30, %v495_v29 }
 0x267   :  { %v492_v33 = vpop.f32.mrf.mxu1 }
 0x268   :  { %v499_v34 = vpack.c.bf16 %v498_v32, %v498_v32 }
 0x269   :  { %v906_v35 = vpop.f32.mrf.mxu1 }
 0x26a   :  { %934 = vmatmul.mubr.msk.bf16.vlgmr.msra.gmra.mxu0 %vm628_vm8, %v499_v34 }
 0x26b   :  { %947 = vmatprep.mubr.msk.bf16.mxu0 %vm1001_vm6, %v1000_v50  ;;  %v990_v50 = vld [vmem:[%s1231_s6 + $0x10] sm:$0xff]  }
 0x26c   :  { %946 = vmatpush3.bf16.msra.mxu0 %v990_v50 }
 0x277   :  { %v586_v36 = vpop.f32.mrf.mxu1 }
 0x279   :  { %v919_v37 = vpop.f32.mrf.mxu1 }
 0x27b   :  { %v589_v38 = vpop.f32.mrf.mxu1 }
 0x27d   :  { %v920_v39 = vpop.f32.mrf.mxu1 }
 0x32a   :  { %v666_v42 = vpop.f32.mrf.mxu0 }
 0x32b   :  { %v667_v44 = vadd.f32 %v666_v42, %v586_v36 }
 0x32c   :  { %v935_v45 = vpop.f32.mrf.mxu0 }
 0x32d   :  { %v673_v46 = vadd.f32 %v672_v43, %v667_v44 }
 0x32e   :  { %v669_v47 = vpop.f32.mrf.mxu0 }
 0x32f   :  { %v674_v48 = vmax.f32 %v673_v46, 0.0 }
 0x330   :  { %v936_v49 = vpop.f32.mrf.mxu0 }
 0x331   :  { %v675_v51 = vpack.c.bf16 %v674_v48, %v674_v48 }
 0x333   :  { %942 = vmatmul.mubr.msk.bf16.vlgmr.msra.gmra.mxu1 %vm693_vm9, %v675_v51 }
 0x3f3   :  { %v731_v53 = vpop.f32.mrf.mxu1 }
 0x3f4   :  { %v732_v54 = vadd.f32 %v731_v53, %v680_v52 }
 0x3f5   :  { %v943_v55 = vpop.f32.mrf.mxu1 }
 0x3f6   :  { %v737_v56 = vmax.f32 %v732_v54, 0.0 }
 0x3f7   :  { %v734_v57 = vpop.f32.mrf.mxu1 }
 0x3f8   :  { %v738_v58 = vpack.c.bf16 %v737_v56, %v737_v56 }
 0x3f9   :  { %v944_v59 = vpop.f32.mrf.mxu1 }
 0x3fa   :  { %948 = vmatmul.mubr.msk.bf16.vlgmr.msra.gmra.mxu0 %vm748_vm10, %v738_v58 }
 0x4ba   :  { %v786_v61 = vpop.f32.mrf.mxu0 }
 0x4bb   :  { %v787_v62 = vadd.f32 %v786_v61, %v741_v60 }
 0x4bc   :  { %v949_v63 = vpop.f32.mrf.mxu0 }
 0x4bd   :  { %v852_v0 = vmul.f32 -1.442695, %v787_v62 }
 0x4be   :  { %v789_v1 = vpop.f32.mrf.mxu0 }
 0x4bf   :  { %995 = vpow2.f32 %v852_v0 }
 0x4c0   :  { %v950_v2 = vpop.f32.mrf.mxu0 }
 0x4cc   :  { %v996_v3 = vpop.eup %995 }
 0x4cd   :  { %v795_v4 = vadd.f32 1.0, %v996_v3 }
 0x4cf   :  { %997 = vrcp.f32 %v795_v4 }
 0x4dc   :  { %v998_v5 = vpop.eup %997 }
 0x4dd   :  { %799 = vst.msk [vmem:[%s1232_s8] sm:$0xff] %vm798_vm11, %v998_v5 }

</bundles_post_ra>
